<compile_context>
chip_gen: v5e
topology: v5e:2x2
jax: 0.10.0
libtpu: 0.0.40
codegen_flags: <defaults>
</compile_context>

<pallas_src>
import functools

import jax
import jax.numpy as jnp
from jax.experimental import pallas as pl
from jax.experimental.pallas import tpu as pltpu

_MANTISSA_BITS = 23
_MANTISSA_MASK = (1 << _MANTISSA_BITS) - 1

_ON_TPU = jax.default_backend() == "tpu"


def _keep_mask_from_bits(bits, threshold: int):
    """keep-with-prob-(1-p) mask from raw random bits (int32 or uint32)."""
    masked = (bits & jnp.asarray(_MANTISSA_MASK, dtype=bits.dtype)).astype(jnp.int32)
    return masked >= jnp.int32(threshold)


def _masked_residual(x, y, keep, inv_keep: float):
    """x + inverted-dropout(y)."""
    if x.dtype == jnp.bfloat16:
        # v6e/v7x have bf16 VALU: keep select/add in bf16 (halves vreg traffic);
        # the scale itself is done in f32 for accuracy then cast back.
        y_scaled = (y.astype(jnp.float32) * jnp.float32(inv_keep)).astype(jnp.bfloat16)
        return x + jnp.where(keep, y_scaled, jnp.zeros_like(y_scaled))
    y32 = y.astype(jnp.float32) * jnp.float32(inv_keep)
    dropped = jnp.where(keep, y32, jnp.zeros_like(y32))
    return (x.astype(jnp.float32) + dropped).astype(x.dtype)


def _make_tpu_kernel(p: float):
    threshold = int(round(p * (1 << _MANTISSA_BITS)))
    inv_keep = 1.0 / (1.0 - p)

    def kernel(seed_ref, x_ref, y_ref, o_ref):
        # Mix the grid position into the seed so each row-tile draws an
        # independent dropout mask.
        pltpu.prng_seed(seed_ref[0], pl.program_id(0))
        # TODO(synk): if a bundle dump ever shows the PRNG/VPU path binding on
        # v7x bf16, halve the draws (one u32 -> two 16-bit fields) instead.
        bits = pltpu.prng_random_bits(y_ref.shape)
        keep = _keep_mask_from_bits(bits, threshold)
        o_ref[...] = _masked_residual(x_ref[...], y_ref[...], keep, inv_keep)

    return kernel


def _make_portable_kernel(p: float):
    # Non-TPU fallback: random bits arrive as a third input.
    threshold = int(round(p * (1 << _MANTISSA_BITS)))
    inv_keep = 1.0 / (1.0 - p)

    def kernel(x_ref, y_ref, bits_ref, o_ref):
        keep = _keep_mask_from_bits(bits_ref[...], threshold)
        o_ref[...] = _masked_residual(x_ref[...], y_ref[...], keep, inv_keep)

    return kernel


def _choose_layout(shape, total: int):
    """Lane-dense (rows, width) view of the flattened tensor.

    The op is elementwise, so any reshape is legal; prefer a last dim that is
    a multiple of 128 so output stores are unmasked full-lane `vst`s.
    """
    d_last = shape[-1] if len(shape) else 1
    if d_last > 0 and d_last % 128 == 0:
        return total // d_last, d_last
    for width in (1024, 512, 256, 128):
        if total % width == 0:
            return total // width, width
    # Odd shapes: keep the natural layout (masked stores; small inputs only).
    return total // d_last, d_last


def _choose_row_tile(rows: int, width: int, itemsize: int) -> int:
    """Row-tile height sized by a ~4 MiB per-array-block byte budget."""
    sub = max(8, 32 // max(1, itemsize))  # sublane packing: 8 f32 / 16 bf16 / 32 i8
    if rows <= sub:
        return rows  # full-height block is always layout-legal
    target_bytes = 4 * 1024 * 1024
    tr = (target_bytes // max(1, width * itemsize)) // sub * sub
    tr = max(sub, tr)
    # Guarantee >= 4 (or at least 2) grid steps so v7x's two TensorCores both
    # get work and the DMA pipeline has something to overlap.
    for steps in (4, 2):
        cap = (rows // steps) // sub * sub
        if cap >= sub:
            tr = min(tr, cap)
            break
    return min(tr, rows)


@functools.partial(jax.jit, static_argnames=("dropout_rate", "training"))
def residual_connection(x, output, *, dropout_rate: float, seed, training: bool = True):
    """JAX/Pallas equivalent of ResidualConnection.forward(x, output)."""
    assert x.shape == output.shape, "x and output must have the same shape"
    p = float(dropout_rate)

    # Eval mode / p == 0: dropout is identity; a bare add fuses into
    # neighbouring XLA ops, so no pallas_call boundary.
    if (not training) or p <= 0.0:
        return x + output
    if p >= 1.0:
        # Everything dropped: result is exactly x.
        return x

    orig_shape = x.shape
    total = 1
    for s in orig_shape:
        total *= s
    itemsize = jnp.dtype(x.dtype).itemsize

    rows, width = _choose_layout(orig_shape, total)
    x2 = x.reshape(rows, width)
    y2 = output.reshape(rows, width)

    tr = _choose_row_tile(rows, width, itemsize)
    grid = (pl.cdiv(rows, tr),)
    tile_spec = pl.BlockSpec((tr, width), lambda i: (i, 0))
    out_shape = jax.ShapeDtypeStruct((rows, width), x.dtype)

    # 3 arrays x 2 pipeline buffers x block bytes, +25% headroom, capped so a
    # v6e-style budget never overshoots v7x's 64 MiB physical VMEM.
    block_bytes = tr * width * itemsize
    vmem_limit = int(6 * block_bytes * 1.25)
    vmem_limit = min(max(vmem_limit, 16 * 1024 * 1024), 48 * 1024 * 1024)

    if _ON_TPU:
        seed_arr = jnp.asarray(seed, dtype=jnp.int32).reshape((1,))
        out = pl.pallas_call(
            _make_tpu_kernel(p),
            out_shape=out_shape,
            grid=grid,
            in_specs=[
                pl.BlockSpec(memory_space=pltpu.MemorySpace.SMEM),  # seed scalar
                tile_spec,  # x
                tile_spec,  # output
            ],
            out_specs=tile_spec,
            compiler_params=pltpu.CompilerParams(
                dimension_semantics=("parallel",),
                vmem_limit_bytes=vmem_limit,
            ),
        )(seed_arr, x2, y2)
    else:
        # TODO(synk): pltpu.prng_* has no non-TPU lowering; generate bits outside.
        key = jax.random.PRNGKey(jnp.asarray(seed, dtype=jnp.int32))
        bits = jax.random.bits(key, (rows, width), dtype=jnp.uint32)
        out = pl.pallas_call(
            _make_portable_kernel(p),
            out_shape=out_shape,
            grid=grid,
            in_specs=[tile_spec, tile_spec, tile_spec],
            out_specs=tile_spec,
        )(x2, y2, bits)

    return out.reshape(orig_shape)


if __name__ == "__main__":
    key = jax.random.PRNGKey(0)
    kx, ky, kbx, kby = jax.random.split(key, 4)

    batch, seq, d_model = 2, 8, 128
    dropout_rate = 0.1

    x = jax.random.normal(kx, (batch, seq, d_model), dtype=jnp.float32)
    output = jax.random.normal(ky, (batch, seq, d_model), dtype=jnp.float32)

    # Training mode: residual + stochastic inverted dropout (Pallas kernel).
    res_train = residual_connection(
        x, output, dropout_rate=dropout_rate, seed=42, training=True
    )
    res_train = jax.block_until_ready(res_train)

    # Eval mode: dropout is identity -> must equal x + output exactly.
    res_eval = residual_connection(
        x, output, dropout_rate=dropout_rate, seed=0, training=False
    )
    res_eval = jax.block_until_ready(res_eval)

    assert res_train.shape == (batch, seq, d_model)
    assert jnp.allclose(res_eval, x + output, atol=1e-6), "eval path mismatch"

    # Every training-mode element is either x (dropped) or x + output/(1-p) (kept).
    diff = res_train - x
    scaled = output * (1.0 / (1.0 - dropout_rate))
    is_drop = jnp.abs(diff) <= 1e-6
    is_keep = jnp.isclose(diff, scaled, atol=1e-4, rtol=1e-4)
    assert bool(jnp.all(is_drop | is_keep)), "dropout semantics mismatch"
    drop_frac = float(jnp.mean(is_drop.astype(jnp.float32)))
    assert drop_frac <= 0.5, f"implausible drop fraction {drop_frac}"

    # Exercise the bf16 path and multi-step tiling as well (compile/run check).
    xb = jax.random.normal(kbx, (4, 32, 256), dtype=jnp.bfloat16)
    yb = jax.random.normal(kby, (4, 32, 256), dtype=jnp.bfloat16)
    res_bf16 = residual_connection(
        xb, yb, dropout_rate=dropout_rate, seed=7, training=True
    )
    res_bf16 = jax.block_until_ready(res_bf16)
    assert res_bf16.shape == xb.shape and res_bf16.dtype == jnp.bfloat16
    assert bool(jnp.all(jnp.isfinite(res_bf16.astype(jnp.float32))))

    print("KERNEL_OK")
</pallas_src>

<mosaic_0001>
module attributes {stable_mosaic.version = 11 : i64} {
  func.func @kernel(%arg0: i32, %arg1: memref<8x128xf32, #tpu.memory_space<vmem>>, %arg2: memref<8x128xf32, #tpu.memory_space<vmem>>, %arg3: memref<8x128xi32, #tpu.memory_space<vmem>>, %arg4: memref<8x128xf32, #tpu.memory_space<vmem>>) attributes {dimension_semantics = [#tpu.dimension_semantics<arbitrary>], iteration_bounds = array<i64: 2>, scalar_prefetch = 0 : i64, scratch_operands = 0 : i64, tpu.core_type = #tpu.core_type<tc>, window_params = [{transform_indices = @transform_0, window_bounds = array<i64: 8, 128>}, {transform_indices = @transform_1, window_bounds = array<i64: 8, 128>}, {transform_indices = @transform_2, window_bounds = array<i64: 8, 128>}, {transform_indices = @transform_3, window_bounds = array<i64: 8, 128>}]} {
    %c0 = arith.constant 0 : index
    %c0_0 = arith.constant 0 : index
    %0 = vector.load %arg3[%c0, %c0_0] : memref<8x128xi32, #tpu.memory_space<vmem>>, vector<8x128xi32>
    %c8388607_i32 = arith.constant 8388607 : i32
    %1 = vector.broadcast %c8388607_i32 : i32 to vector<8x128xi32>
    %2 = arith.andi %0, %1 : vector<8x128xi32>
    %c838861_i32 = arith.constant 838861 : i32
    %3 = vector.broadcast %c838861_i32 : i32 to vector<8x128xi32>
    %4 = arith.cmpi sge, %2, %3 : vector<8x128xi32>
    %c0_1 = arith.constant 0 : index
    %c0_2 = arith.constant 0 : index
    %5 = vector.load %arg1[%c0_1, %c0_2] : memref<8x128xf32, #tpu.memory_space<vmem>>, vector<8x128xf32>
    %c0_3 = arith.constant 0 : index
    %c0_4 = arith.constant 0 : index
    %6 = vector.load %arg2[%c0_3, %c0_4] : memref<8x128xf32, #tpu.memory_space<vmem>>, vector<8x128xf32>
    %cst = arith.constant 1.11111116 : f32
    %7 = vector.broadcast %cst : f32 to vector<8x128xf32>
    %8 = arith.mulf %6, %7 : vector<8x128xf32>
    %cst_5 = arith.constant 0.000000e+00 : f32
    %9 = vector.broadcast %cst_5 : f32 to vector<8x128xf32>
    %10 = arith.select %4, %8, %9 : vector<8x128xi1>, vector<8x128xf32>
    %11 = arith.addf %5, %10 : vector<8x128xf32>
    %c0_6 = arith.constant 0 : index
    %c0_7 = arith.constant 0 : index
    %12 = vector.load %arg4[%c0_6, %c0_7] : memref<8x128xf32, #tpu.memory_space<vmem>>, vector<8x128xf32>
    tpu.vector_store %arg4[%c0_6, %c0_7], %11 {strides = array<i32>} : memref<8x128xf32, #tpu.memory_space<vmem>>, vector<8x128xf32>,
    return
  }
  func.func @transform_0(%arg0: i32) -> (i32, i32) {
    %c0_i32 = arith.constant 0 : i32
    %c0_i32_0 = arith.constant 0 : i32
    return %arg0, %c0_i32 : i32, i32
  }
  func.func @transform_1(%arg0: i32) -> (i32, i32) {
    %c0_i32 = arith.constant 0 : i32
    %c0_i32_0 = arith.constant 0 : i32
    return %arg0, %c0_i32 : i32, i32
  }
  func.func @transform_2(%arg0: i32) -> (i32, i32) {
    %c0_i32 = arith.constant 0 : i32
    %c0_i32_0 = arith.constant 0 : i32
    return %arg0, %c0_i32 : i32, i32
  }
  func.func @transform_3(%arg0: i32) -> (i32, i32) {
    %c0_i32 = arith.constant 0 : i32
    %c0_i32_0 = arith.constant 0 : i32
    return %arg0, %c0_i32 : i32, i32
  }
}

</mosaic_0001>

<bundles_post_ra>
// kernel: residual_connection.1
= control target key start
LH: loop header
LB: loop body
LE: loop exit
PB: predicated region body
PF: predicated region fallthrough
CT: control target
= control target key end

     0   :  { %8 = vsyncpa [#allocation3], 0  ;;  %s528_s0 = inlined_call_operand.vmem [shape: f32[16,128], index: 0, kind: input, shape index: {}]   ;;  %s529_s1 = inlined_call_operand.vmem [shape: f32[16,128], index: 1, kind: input, shape index: {}]   ;;  %s530_s2 = inlined_call_operand.vmem [shape: u32[16,128], index: 2, kind: input, shape index: {}]   ;;  %s531_s3 = inlined_call_operand.hbm [shape: f32[16,128], index: 3, kind: output, shape index: {}]  }
   0x1   :  { %10 = vsyncpa [#allocation3 + $0x1], 0  ;;  %s443_s12 = smov 0   ;;  %s445_s13 = smov 0  }
   0x2   :  { %s447_s14 = smov 0   ;;  %s449_s15 = smov 0  }
   0x3 LB: > { %s307_s16 = sadd.s32 4294967295, %s421_s15   ;;  %s308_s17 = sadd.s32 4294967294, %s421_s15   ;;  %s421_s15 = sphi %s449_s15, %s537_s15   ;;  %s417_s14 = sphi %s447_s14, %s536_s14   ;;  %s413_s13 = sphi %s445_s13, %s535_s13   ;;  %s409_s12 = sphi %s443_s12, %s534_s12  }
   0x4   : > { %s466_s18 = sadd.s32 1, %s421_s15   ;;  %s101_s19 = sadd.s32 1, %s417_s14 }
   0x5   : > { %s98_s20 = ssub.s32 %s421_s15, %s466_s18  ;;  %p111_p0 = scmp.ne.s32.totalorder %s417_s14, %s413_s13 }
   0x6   : > { %p99_p1 = scmp.eq.s32.totalorder %s98_s20, 0  ;;  %p112_p2 = scmp.eq.s32.totalorder %s307_s16, 1 }
   0x7   : > { %p117_p3 = scmp.ne.s32.totalorder %s413_s13, %s409_s12  ;;  %p118_p4 = scmp.eq.s32.totalorder %s308_s17, 1 }
   0x8   : > { %s476_s21 = scalar_select %p99_p1, %s417_s14, %s101_s19  }
   0x9   : > { %p478_p5 = por %p112_p2, %p111_p0  ;;  %p482_p6 = por %p118_p4, %p117_p3 }
   0xa   : > { %p311_p7 = scmp.ge.s32.totalorder %s421_s15, 1  ;;  %p157_p8 = scmp.lt.s32.totalorder %s421_s15, 3 }
   0xc   : > { %p158_p9 = pnand %p311_p7, %p157_p8 }
   0xd   : > { %s185_s24 = sand.u32 (!%p158_p9), 1, %s413_s13   ;;  %p188_p10 = scmp.lt.s32.totalorder (!%p158_p9), %s307_s16, 1 }
   0xe   : > { %161 = sbr.rel (%p158_p9) target bundleno = 33 (0x21), region = 32  ;;  %s312_s25 = sshll.u32 (!%p158_p9), %s185_s24, 3 }
   0xf   : > { %s317_s26 = sshll.u32 (!%p158_p9), %s307_s16, 3 }
  0x10   : > { %s220_s6 = scalar_lea.hbm (!%p158_p9), %s531_s3, %s317_s26  ;;  %s210_s26 = scalar_lea.sflag (!%p158_p9), [#allocation3], %s185_s24 }
  0x11   : > { %s224_s20 = sshll.u32 (!%p158_p9), %s220_s6, 4  ;;  %s225_s20 = int_to_ptr.hbm [resolvable:$true] %s224_s20 }
  0x12   : > { %s373_s28 = sshra.s32 (!%p158_p9), %s225_s20, 4  ;;  %s374_s28 = int_to_ptr.hbm [resolvable:$true] %s373_s28 }
  0x13   : > { %s539_s16 = smov (!%p188_p10, %s307_s16), 1  ;;  %s375_s29 = scalar_lea.hbm %s374_s28, 8 }
  0x14   : > { %s313_s27 = sshll.u32 %s539_s16, 3  ;;  %s187_s16 = scalar_lea.vmem [#allocation2], %s312_s25 }
  0x15   : > { %s195_s30 = scalar_lea.vmem %s529_s1, %s313_s27  ;;  %s191_s9 = scalar_lea.vmem %s528_s0, %s313_s27 }
  0x16   : > { %s199_s17 = scalar_lea.vmem %s530_s2, %s313_s27  ;;  %v204_v0 = vld [vmem:[%s195_s30] sm:$0xff]  ;;  %s222_s19 = sshll.u32 %s187_s16, 4  ;;  %s223_s19 = int_to_ptr.vmem [resolvable:$true] %s222_s19 }
  0x17   : > { %v200_v1 = vld [vmem:[%s199_s17] sm:$0xff]  ;;  %v205_v2 = vmul.f32 1.1111112, %v204_v0  ;;  %p376_p11 = scmp.ne.s32.totalorder %s374_s28, %s375_s29  ;;  %s379_s25 = scalar_lea.hbm %s531_s3, 16 }
  0x18   : > { %v201_v3 = vand.u32 8388607, %v200_v1  ;;  %v203_v4 = vld [vmem:[%s191_s9] sm:$0xff]  ;;  %p380_p0 = scmp.lt.s32.totalorder %s374_s28, %s531_s3  ;;  %p381_p1 = scmp.lt.s32.totalorder %s379_s25, %s375_s29 }
  0x19   : > { %p377_p12 = pnand %p376_p11, %p478_p5 }
  0x1a   : > { %vm202_vm0 = vcmp.ge.s32.totalorder %v201_v3, 838861  ;;  %p382_p2 = por %p381_p1, %p380_p0 }
  0x1b   : > { %v206_v5 = vsel %vm202_vm0, %v205_v2, 0.0  ;;  %p378_p13 = pneg %p377_p12 }
  0x1c   : > { %v207_v6 = vadd.f32 %v206_v5, %v203_v4 }
  0x1d   : > { %p383_p3 = pnand %p382_p2, %p378_p13 }
  0x1e   : > { %208 = vst [vmem:[%s187_s16] sm:$0xff] %v207_v6 }
  0x1f   : > { %386 = shalt.err (!%p383_p3)
}
  0x20   : > { %320 = dma.vmem_to_hbm [thread:$0]  (%p478_p5), %s223_s19, 128, %s225_s20, %s210_s26  }
  0x21 PF: > { %p326_p4 = scmp.ge.s32.totalorder %s421_s15, 2  ;;  %s236_s24 = sand.u32 1, %s409_s12  }
  0x22   : > { %s237_s6 = scalar_lea.sflag [#allocation3], %s236_s24 }
  0x23   : > { %p323_p7 = pnand %p326_p4, %p482_p6 }
  0x25   : > { %p324_p8 = pneg %p323_p7 }
  0x27   : > { %404 = dma.done.wait (%p324_p8), %s237_s6, 128  }
  0x28   : > { %406 = vsyncadd (%p324_p8), %s237_s6, 4294967168  ;;  %p13_p9 = scmp.ge.s32.totalorder %s466_s18, 4   ;;  %s534_s12 = smov %s413_s13 }
  0x29   : > { %s535_s13 = smov %s417_s14  ;;  %s536_s14 = smov %s476_s21 }
  0x2a   : > { %s537_s15 = smov %s466_s18  ;;  %15 = sbr.rel (!%p13_p9) target bundleno = 3 (0x3), region = 73 }
  0x2f   :  { %243 = vsyncpa [#allocation3], 1 }
  0x30   :  { %245 = vsyncpa [#allocation3 + $0x1], 1 }

</bundles_post_ra>
